<compile_context>
chip_gen: v6e
topology: v6e:2x2x1
jax: 0.10.0
libtpu: 0.0.40
codegen_flags: <defaults>
</compile_context>

<pallas_src>
import functools

import jax
import jax.numpy as jnp
from jax import lax
from jax.experimental import pallas as pl
from jax.experimental.pallas import tpu as pltpu


N_PAD_LANES = 128  # lane-dense output width (n_y padded up to this) while overhead-bound


# ----------------------------- Pallas kernel ---------------------------------
def _fused_rec_kernel(idx_ref, t1_ref, b1_ref, w2_ref, b2_ref, w3_ref, b3_ref,
                      o_ref, *, feat_num, vocab):
    """Fused embedding lookup (multi-hot matmul) + 3-layer MLP, all operands in VMEM."""
    tb = idx_ref.shape[0]           # batch tile
    fvp = t1_ref.shape[0]           # feat_num * vocab, padded to a multiple of 8

    idx = idx_ref[...]                                           # (TB, feat) int32
    col = lax.broadcasted_iota(jnp.int32, (tb, fvp), 1)           # column ids 0..fvp-1

    # Per-feature target columns precomputed once: idx[:, f] + f*vocab.
    offs = (jnp.arange(feat_num, dtype=jnp.int32) * vocab).reshape(1, feat_num)
    tgt = idx + offs                                              # (TB, feat)

    # Multi-hot selector: feature f owns columns [f*vocab, (f+1)*vocab).
    # Built in int32/f32 (v5e VPU has no bf16); first compare seeds mh (no zeros+add pass).
    mh = (col == tgt[:, 0:1]).astype(jnp.float32)
    for f in range(1, feat_num):                                  # static tiny loop (VPU)
        mh = mh + (col == tgt[:, f:f + 1]).astype(jnp.float32)

    mh16 = mh.astype(jnp.bfloat16)                                # 0/1: exact in bf16

    # Layer 1: gather + first Linear fused via precomputed T1 (= per-feature E @ W1_f).
    h1 = jnp.dot(mh16, t1_ref[...], preferred_element_type=jnp.float32) + b1_ref[...]
    h1 = jnp.maximum(h1, 0.0)
    h2 = jnp.dot(h1.astype(jnp.bfloat16), w2_ref[...],
                 preferred_element_type=jnp.float32) + b2_ref[...]
    h2 = jnp.maximum(h2, 0.0)
    out = jnp.dot(h2.astype(jnp.bfloat16), w3_ref[...],
                  preferred_element_type=jnp.float32) + b3_ref[...]
    o_ref[...] = out.astype(o_ref.dtype)                          # lane-dense (TB, 128) store


def fused_forward(idx, t1, b1, w2, b2, w3_pad, b3_pad, *, feat_num, vocab, n_y):
    B = idx.shape[0]

    # Batch tile: cap at 256 (MXU-height aligned on v6e/v7x, keeps mh/h1/h2/out near the
    # 64-vreg budget so nothing spills), and size it so nb >= 2 whenever B >= 16 so the
    # "parallel" axis shards across both v7x TensorCores and DMAs overlap compute.
    half = (B + 1) // 2
    tb = max(8, min(256, ((half + 7) // 8) * 8))
    b_pad = ((B + tb - 1) // tb) * tb
    if b_pad != B:
        idx = jnp.pad(idx, ((0, b_pad - B), (0, 0)))              # index-0 rows, sliced off
    nb = b_pad // tb

    def const_spec(shape):
        # Constant block index -> Pallas keeps the block VMEM-resident (no per-step re-DMA).
        return pl.BlockSpec(shape, lambda i: (0, 0))

    out = pl.pallas_call(
        functools.partial(_fused_rec_kernel, feat_num=feat_num, vocab=vocab),
        out_shape=jax.ShapeDtypeStruct((b_pad, N_PAD_LANES), jnp.float32),
        grid=(nb,),
        in_specs=[
            pl.BlockSpec((tb, feat_num), lambda i: (i, 0)),       # indices, blocked over batch
            const_spec(t1.shape),
            const_spec(b1.shape),
            const_spec(w2.shape),
            const_spec(b2.shape),
            const_spec(w3_pad.shape),
            const_spec(b3_pad.shape),
        ],
        out_specs=pl.BlockSpec((tb, N_PAD_LANES), lambda i: (i, 0)),
        compiler_params=pltpu.CompilerParams(
            dimension_semantics=("parallel",),
        ),
    )(idx, t1, b1, w2, b2, w3_pad, b3_pad)

    return out[:B, :n_y]


# ----------------------------- Model wrapper ----------------------------------
class TaskDiffModelJAX:
    """Synthetic JAX/Pallas re-implementation of TaskDiffModel.forward."""

    def __init__(self, key, *, u_in_dim=3, i_in_dim=3, emb_size=16,
                 hidden=64, n_y=5, vocab=10):
        self.u_in_dim = u_in_dim
        self.i_in_dim = i_in_dim
        self.emb_size = emb_size
        self.feat_num = u_in_dim + i_in_dim
        self.x_dim = self.feat_num * emb_size
        self.n_y = n_y
        self.vocab = vocab

        keys = jax.random.split(key, 8)
        s = 0.1
        # Per-feature embedding tables: (feat, vocab, emb_size)
        self.user_emb = s * jax.random.normal(keys[0], (u_in_dim, vocab, emb_size), jnp.float32)
        self.item_emb = s * jax.random.normal(keys[1], (i_in_dim, vocab, emb_size), jnp.float32)
        # Decoder MLP params (original parameterization, used by the reference)
        self.w1 = s * jax.random.normal(keys[2], (self.x_dim, hidden), jnp.float32)
        self.b1 = s * jax.random.normal(keys[3], (1, hidden), jnp.float32)
        self.w2 = s * jax.random.normal(keys[4], (hidden, hidden), jnp.float32)
        self.b2 = s * jax.random.normal(keys[5], (1, hidden), jnp.float32)
        self.w3 = s * jax.random.normal(keys[6], (hidden, n_y), jnp.float32)
        self.b3 = s * jax.random.normal(keys[7], (1, n_y), jnp.float32)

        # ---- one-time precompute for the fused kernel ----
        # T1[f*vocab + v, :] = E_f[v, :] @ W1[f*emb:(f+1)*emb, :]   -> (feat*vocab, hidden)
        E = jnp.concatenate([self.user_emb, self.item_emb], axis=0)          # (feat, vocab, emb)
        W1r = self.w1.reshape(self.feat_num, emb_size, hidden)               # (feat, emb, hidden)
        fv = self.feat_num * vocab
        fv_pad = ((fv + 7) // 8) * 8                                          # exact sublane tiling
        t1_f32 = jnp.einsum("fve,feh->fvh", E, W1r).reshape(fv, hidden)
        t1_f32 = jnp.pad(t1_f32, ((0, fv_pad - fv), (0, 0)))                  # zero rows, never hit
        # bf16 weights at the MXU (f32 accumulation); biases stay f32.
        self.t1 = t1_f32.astype(jnp.bfloat16)
        self.w2_k = self.w2.astype(jnp.bfloat16)
        # Lane-dense padded final layer (n_y -> 128 columns, zero pad), bf16.
        self.w3_pad = (jnp.zeros((hidden, N_PAD_LANES), jnp.float32)
                       .at[:, :n_y].set(self.w3)).astype(jnp.bfloat16)
        self.b3_pad = jnp.zeros((1, N_PAD_LANES), jnp.float32).at[:, :n_y].set(self.b3)

    # Original (unfused) embedding path — kept for the pure-JAX reference only.
    def get_embedding(self, x1, x2):
        u = jnp.stack([self.user_emb[f][x1[:, f]] for f in range(self.u_in_dim)], axis=1)
        i = jnp.stack([self.item_emb[f][x2[:, f]] for f in range(self.i_in_dim)], axis=1)
        x = jnp.concatenate([u, i], axis=1)
        return x.reshape(x.shape[0], self.x_dim)

    def forward(self, x1, x2, weights_params=None):
        idx = jnp.concatenate([x1, x2], axis=1).astype(jnp.int32)   # (B, feat)
        return fused_forward(idx, self.t1, self.b1, self.w2_k, self.b2,
                             self.w3_pad, self.b3_pad,
                             feat_num=self.feat_num, vocab=self.vocab, n_y=self.n_y)


# ----------------------------- Reference (pure JAX, f32) ----------------------
def reference_forward(model, x1, x2):
    x = model.get_embedding(x1, x2)
    h1 = jnp.maximum(x @ model.w1 + model.b1, 0.0)
    h2 = jnp.maximum(h1 @ model.w2 + model.b2, 0.0)
    return h2 @ model.w3 + model.b3


if __name__ == "__main__":
    key = jax.random.PRNGKey(0)
    k_model, k_x1, k_x2 = jax.random.split(key, 3)

    B = 8
    model = TaskDiffModelJAX(k_model, u_in_dim=3, i_in_dim=3, emb_size=16,
                             hidden=64, n_y=5, vocab=10)

    x1 = jax.random.randint(k_x1, (B, model.u_in_dim), 0, model.vocab, dtype=jnp.int32)
    x2 = jax.random.randint(k_x2, (B, model.i_in_dim), 0, model.vocab, dtype=jnp.int32)

    out = model.forward(x1, x2)
    out = jax.block_until_ready(out)

    ref = jax.block_until_ready(reference_forward(model, x1, x2))
    assert out.shape == (B, model.n_y), out.shape
    # bf16 weights on the MXU (f32 accumulation): tolerance relaxed vs the all-f32 path.
    assert jnp.allclose(out, ref, atol=1e-2, rtol=1e-2), "mismatch vs reference"

    print("KERNEL_OK")
</pallas_src>

<mosaic_0001>
module attributes {stable_mosaic.version = 11 : i64} {
  func.func @_fused_rec_kernel(%arg0: i32, %arg1: memref<8x6xi32, #tpu.memory_space<vmem>>, %arg2: memref<64x64xbf16, #tpu.memory_space<vmem>>, %arg3: memref<1x64xf32, #tpu.memory_space<vmem>>, %arg4: memref<64x64xbf16, #tpu.memory_space<vmem>>, %arg5: memref<1x64xf32, #tpu.memory_space<vmem>>, %arg6: memref<64x128xbf16, #tpu.memory_space<vmem>>, %arg7: memref<1x128xf32, #tpu.memory_space<vmem>>, %arg8: memref<8x128xf32, #tpu.memory_space<vmem>>) attributes {dimension_semantics = [#tpu.dimension_semantics<parallel>], iteration_bounds = array<i64: 1>, scalar_prefetch = 0 : i64, scratch_operands = 0 : i64, tpu.core_type = #tpu.core_type<tc>, window_params = [{transform_indices = @transform_0, window_bounds = array<i64: 8, 6>}, {pipeline_mode = #tpu.pipeline_mode<synchronous>, transform_indices = @transform_1, window_bounds = array<i64: 64, 64>}, {pipeline_mode = #tpu.pipeline_mode<synchronous>, transform_indices = @transform_2, window_bounds = array<i64: 1, 64>}, {pipeline_mode = #tpu.pipeline_mode<synchronous>, transform_indices = @transform_3, window_bounds = array<i64: 64, 64>}, {pipeline_mode = #tpu.pipeline_mode<synchronous>, transform_indices = @transform_4, window_bounds = array<i64: 1, 64>}, {pipeline_mode = #tpu.pipeline_mode<synchronous>, transform_indices = @transform_5, window_bounds = array<i64: 64, 128>}, {pipeline_mode = #tpu.pipeline_mode<synchronous>, transform_indices = @transform_6, window_bounds = array<i64: 1, 128>}, {transform_indices = @transform_7, window_bounds = array<i64: 8, 128>}]} {
    %c0 = arith.constant 0 : index
    %c0_0 = arith.constant 0 : index
    %0 = vector.load %arg1[%c0, %c0_0] : memref<8x6xi32, #tpu.memory_space<vmem>>, vector<8x6xi32>
    %1 = tpu.iota {dimensions = array<i32: 1>} : vector<8x64xi32>
    %2 = tpu.iota {dimensions = array<i32: 1>} : vector<1x6xi32>
    %3 = vector.shape_cast %2 : vector<1x6xi32> to vector<6xi32>
    %c10_i32 = arith.constant 10 : i32
    %4 = vector.broadcast %c10_i32 : i32 to vector<6xi32>
    %5 = arith.muli %3, %4 : vector<6xi32>
    %6 = vector.shape_cast %5 : vector<6xi32> to vector<1x6xi32>
    %7 = vector.broadcast %6 : vector<1x6xi32> to vector<8x6xi32>
    %8 = arith.addi %0, %7 : vector<8x6xi32>
    %9 = vector.extract_strided_slice %8 {offsets = [0, 0], sizes = [8, 1], strides = [1, 1]} : vector<8x6xi32> to vector<8x1xi32>
    %10 = vector.broadcast %9 : vector<8x1xi32> to vector<8x64xi32>
    %11 = arith.cmpi eq, %1, %10 : vector<8x64xi32>
    %12 = arith.extui %11 : vector<8x64xi1> to vector<8x64xi32>
    %13 = arith.sitofp %12 : vector<8x64xi32> to vector<8x64xf32>
    %14 = vector.extract_strided_slice %8 {offsets = [0, 1], sizes = [8, 1], strides = [1, 1]} : vector<8x6xi32> to vector<8x1xi32>
    %15 = vector.broadcast %14 : vector<8x1xi32> to vector<8x64xi32>
    %16 = arith.cmpi eq, %1, %15 : vector<8x64xi32>
    %17 = arith.extui %16 : vector<8x64xi1> to vector<8x64xi32>
    %18 = arith.sitofp %17 : vector<8x64xi32> to vector<8x64xf32>
    %19 = arith.addf %13, %18 : vector<8x64xf32>
    %20 = vector.extract_strided_slice %8 {offsets = [0, 2], sizes = [8, 1], strides = [1, 1]} : vector<8x6xi32> to vector<8x1xi32>
    %21 = vector.broadcast %20 : vector<8x1xi32> to vector<8x64xi32>
    %22 = arith.cmpi eq, %1, %21 : vector<8x64xi32>
    %23 = arith.extui %22 : vector<8x64xi1> to vector<8x64xi32>
    %24 = arith.sitofp %23 : vector<8x64xi32> to vector<8x64xf32>
    %25 = arith.addf %19, %24 : vector<8x64xf32>
    %26 = vector.extract_strided_slice %8 {offsets = [0, 3], sizes = [8, 1], strides = [1, 1]} : vector<8x6xi32> to vector<8x1xi32>
    %27 = vector.broadcast %26 : vector<8x1xi32> to vector<8x64xi32>
    %28 = arith.cmpi eq, %1, %27 : vector<8x64xi32>
    %29 = arith.extui %28 : vector<8x64xi1> to vector<8x64xi32>
    %30 = arith.sitofp %29 : vector<8x64xi32> to vector<8x64xf32>
    %31 = arith.addf %25, %30 : vector<8x64xf32>
    %32 = vector.extract_strided_slice %8 {offsets = [0, 4], sizes = [8, 1], strides = [1, 1]} : vector<8x6xi32> to vector<8x1xi32>
    %33 = vector.broadcast %32 : vector<8x1xi32> to vector<8x64xi32>
    %34 = arith.cmpi eq, %1, %33 : vector<8x64xi32>
    %35 = arith.extui %34 : vector<8x64xi1> to vector<8x64xi32>
    %36 = arith.sitofp %35 : vector<8x64xi32> to vector<8x64xf32>
    %37 = arith.addf %31, %36 : vector<8x64xf32>
    %38 = vector.extract_strided_slice %8 {offsets = [0, 5], sizes = [8, 1], strides = [1, 1]} : vector<8x6xi32> to vector<8x1xi32>
    %39 = vector.broadcast %38 : vector<8x1xi32> to vector<8x64xi32>
    %40 = arith.cmpi eq, %1, %39 : vector<8x64xi32>
    %41 = arith.extui %40 : vector<8x64xi1> to vector<8x64xi32>
    %42 = arith.sitofp %41 : vector<8x64xi32> to vector<8x64xf32>
    %43 = arith.addf %37, %42 : vector<8x64xf32>
    %44 = arith.truncf %43 : vector<8x64xf32> to vector<8x64xbf16>
    %c0_1 = arith.constant 0 : index
    %c0_2 = arith.constant 0 : index
    %45 = vector.load %arg2[%c0_1, %c0_2] : memref<64x64xbf16, #tpu.memory_space<vmem>>, vector<64x64xbf16>
    %cst = arith.constant dense<0.000000e+00> : vector<8x64xf32>
    %46 = tpu.matmul %44, %45, %cst {dimension_numbers = #tpu.dot_dimension_numbers<[1], [0], [0], [1], [0, 0, 1, 1], [], []>} : vector<8x64xbf16>, vector<64x64xbf16>, vector<8x64xf32> -> vector<8x64xf32>
    %c0_3 = arith.constant 0 : index
    %c0_4 = arith.constant 0 : index
    %47 = vector.load %arg3[%c0_3, %c0_4] : memref<1x64xf32, #tpu.memory_space<vmem>>, vector<1x64xf32>
    %48 = vector.broadcast %47 : vector<1x64xf32> to vector<8x64xf32>
    %49 = arith.addf %46, %48 : vector<8x64xf32>
    %cst_5 = arith.constant 0.000000e+00 : f32
    %50 = vector.broadcast %cst_5 : f32 to vector<8x64xf32>
    %51 = arith.maximumf %49, %50 : vector<8x64xf32>
    %52 = arith.truncf %51 : vector<8x64xf32> to vector<8x64xbf16>
    %c0_6 = arith.constant 0 : index
    %c0_7 = arith.constant 0 : index
    %53 = vector.load %arg4[%c0_6, %c0_7] : memref<64x64xbf16, #tpu.memory_space<vmem>>, vector<64x64xbf16>
    %cst_8 = arith.constant dense<0.000000e+00> : vector<8x64xf32>
    %54 = tpu.matmul %52, %53, %cst_8 {dimension_numbers = #tpu.dot_dimension_numbers<[1], [0], [0], [1], [0, 0, 1, 1], [], []>} : vector<8x64xbf16>, vector<64x64xbf16>, vector<8x64xf32> -> vector<8x64xf32>
    %c0_9 = arith.constant 0 : index
    %c0_10 = arith.constant 0 : index
    %55 = vector.load %arg5[%c0_9, %c0_10] : memref<1x64xf32, #tpu.memory_space<vmem>>, vector<1x64xf32>
    %56 = vector.broadcast %55 : vector<1x64xf32> to vector<8x64xf32>
    %57 = arith.addf %54, %56 : vector<8x64xf32>
    %cst_11 = arith.constant 0.000000e+00 : f32
    %58 = vector.broadcast %cst_11 : f32 to vector<8x64xf32>
    %59 = arith.maximumf %57, %58 : vector<8x64xf32>
    %60 = arith.truncf %59 : vector<8x64xf32> to vector<8x64xbf16>
    %c0_12 = arith.constant 0 : index
    %c0_13 = arith.constant 0 : index
    %61 = vector.load %arg6[%c0_12, %c0_13] : memref<64x128xbf16, #tpu.memory_space<vmem>>, vector<64x128xbf16>
    %cst_14 = arith.constant dense<0.000000e+00> : vector<8x128xf32>
    %62 = tpu.matmul %60, %61, %cst_14 {dimension_numbers = #tpu.dot_dimension_numbers<[1], [0], [0], [1], [0, 0, 1, 1], [], []>} : vector<8x64xbf16>, vector<64x128xbf16>, vector<8x128xf32> -> vector<8x128xf32>
    %c0_15 = arith.constant 0 : index
    %c0_16 = arith.constant 0 : index
    %63 = vector.load %arg7[%c0_15, %c0_16] : memref<1x128xf32, #tpu.memory_space<vmem>>, vector<1x128xf32>
    %64 = vector.broadcast %63 : vector<1x128xf32> to vector<8x128xf32>
    %65 = arith.addf %62, %64 : vector<8x128xf32>
    %c0_17 = arith.constant 0 : index
    %c0_18 = arith.constant 0 : index
    %66 = vector.load %arg8[%c0_17, %c0_18] : memref<8x128xf32, #tpu.memory_space<vmem>>, vector<8x128xf32>
    tpu.vector_store %arg8[%c0_17, %c0_18], %65 {strides = array<i32>} : memref<8x128xf32, #tpu.memory_space<vmem>>, vector<8x128xf32>,
    return
  }
  func.func @transform_0(%arg0: i32) -> (i32, i32) {
    %c0_i32 = arith.constant 0 : i32
    %c0_i32_0 = arith.constant 0 : i32
    return %arg0, %c0_i32 : i32, i32
  }
  func.func @transform_1(%arg0: i32) -> (i32, i32) {
    %c0_i32 = arith.constant 0 : i32
    %c0_i32_0 = arith.constant 0 : i32
    %c0_i32_1 = arith.constant 0 : i32
    return %c0_i32, %c0_i32_0 : i32, i32
  }
  func.func @transform_2(%arg0: i32) -> (i32, i32) {
    %c0_i32 = arith.constant 0 : i32
    %c0_i32_0 = arith.constant 0 : i32
    %c0_i32_1 = arith.constant 0 : i32
    return %c0_i32, %c0_i32_0 : i32, i32
  }
  func.func @transform_3(%arg0: i32) -> (i32, i32) {
    %c0_i32 = arith.constant 0 : i32
    %c0_i32_0 = arith.constant 0 : i32
    %c0_i32_1 = arith.constant 0 : i32
    return %c0_i32, %c0_i32_0 : i32, i32
  }
  func.func @transform_4(%arg0: i32) -> (i32, i32) {
    %c0_i32 = arith.constant 0 : i32
    %c0_i32_0 = arith.constant 0 : i32
    %c0_i32_1 = arith.constant 0 : i32
    return %c0_i32, %c0_i32_0 : i32, i32
  }
  func.func @transform_5(%arg0: i32) -> (i32, i32) {
    %c0_i32 = arith.constant 0 : i32
    %c0_i32_0 = arith.constant 0 : i32
    %c0_i32_1 = arith.constant 0 : i32
    return %c0_i32, %c0_i32_0 : i32, i32
  }
  func.func @transform_6(%arg0: i32) -> (i32, i32) {
    %c0_i32 = arith.constant 0 : i32
    %c0_i32_0 = arith.constant 0 : i32
    %c0_i32_1 = arith.constant 0 : i32
    return %c0_i32, %c0_i32_0 : i32, i32
  }
  func.func @transform_7(%arg0: i32) -> (i32, i32) {
    %c0_i32 = arith.constant 0 : i32
    %c0_i32_0 = arith.constant 0 : i32
    return %arg0, %c0_i32 : i32, i32
  }
}

</mosaic_0001>

<bundles_post_ra>
// kernel: tpu_custom_call.1
= control target key start
LH: loop header
LB: loop body
LE: loop exit
PB: predicated region body
PF: predicated region fallthrough
CT: control target
= control target key end

     0   :  { %12 = vsyncpa [#allocation3], 0  ;;  %s737_s0 = inlined_call_operand.hbm [shape: s32[8,6], index: 0, kind: input, shape index: {}]   ;;  %s738_s1 = inlined_call_operand.hbm [shape: bf16[64,64], index: 1, kind: input, shape index: {}]   ;;  %s739_s2 = inlined_call_operand.vmem [shape: f32[1,64], index: 2, kind: input, shape index: {}]   ;;  %s740_s3 = inlined_call_operand.hbm [shape: bf16[64,64], index: 3, kind: input, shape index: {}]   ;;  %s741_s4 = inlined_call_operand.vmem [shape: f32[1,64], index: 4, kind: input, shape index: {}]   ;;  %s742_s5 = inlined_call_operand.hbm [shape: bf16[64,128], index: 5, kind: input, shape index: {}]   ;;  %s743_s6 = inlined_call_operand.vmem [shape: f32[1,128], index: 6, kind: input, shape index: {}]   ;;  %s744_s7 = inlined_call_operand.hbm [shape: f32[8,128], index: 7, kind: output, shape index: {}]  }
   0x1   :  { %13 = vsyncpa [#allocation6], 0 }
   0x2   :  { %14 = vsyncpa [#allocation9], 0 }
   0x3   :  { %15 = vsyncpa [#allocation4], 0  ;;  %s613_s24 = smov [#allocation5]  }
   0x4   :  { %s31_s25 = sshll.u32 %s613_s24, 4  ;;  %s32_s25 = int_to_ptr.vmem [resolvable:$true] %s31_s25 }
   0x5   :  { %s513_s26 = scalar_lea.vmem %s32_s25, 512  ;;  %p518_p1 = scmp.lt.s32.totalorder %s32_s25, %s32_s25 }
   0x6   :  { %p514_p0 = scmp.ne.s32.totalorder %s32_s25, %s513_s26  ;;  %p519_p2 = scmp.lt.s32.totalorder %s513_s26, %s513_s26 }
   0x8   :  { %p520_p3 = por %p519_p2, %p518_p1 }
   0xa   :  { %p521_p4 = pnand %p520_p3, %p514_p0 }
   0xc   :  { %524 = shalt.err (!%p521_p4)
}
   0xd   :  { %s614_s27 = smov 64   ;;  %s615_s28 = smov 4  }
   0xe   :  { %37 = dma.hbm_to_vmem [thread:$0]  %s738_s1, 512, %s32_s25, [#allocation6], %s614_s27, %s614_s27, %s615_s28  }
   0xf   :  { %s616_s8 = smov [#allocation2]   ;;  %s617_s10 = smov [#allocation7]  }
  0x10   :  { %s22_s9 = sshll.u32 %s616_s8, 4  ;;  %s45_s11 = sshll.u32 %s617_s10, 4  ;;  %s23_s9 = int_to_ptr.vmem [resolvable:$true] %s22_s9  ;;  %s46_s11 = int_to_ptr.vmem [resolvable:$true] %s45_s11 }
  0x11   :  { %s533_s12 = scalar_lea.vmem %s23_s9, 128  ;;  %p538_p6 = scmp.lt.s32.totalorder %s23_s9, %s23_s9 }
  0x12   :  { %p534_p5 = scmp.ne.s32.totalorder %s23_s9, %s533_s12  ;;  %p539_p7 = scmp.lt.s32.totalorder %s533_s12, %s533_s12 }
  0x14   :  { %p540_p8 = por %p539_p7, %p538_p6 }
  0x16   :  { %p541_p9 = pnand %p540_p8, %p534_p5 }
  0x18   :  { %544 = shalt.err (!%p541_p9)
}
  0x19   :  { %25 = dma.hbm_to_vmem [thread:$0]  %s737_s0, 128, %s23_s9, [#allocation3]  }
  0x1a   :  { %s553_s15 = scalar_lea.vmem %s46_s11, 512  ;;  %p558_p11 = scmp.lt.s32.totalorder %s46_s11, %s46_s11 }
  0x1b   :  { %p554_p10 = scmp.ne.s32.totalorder %s46_s11, %s553_s15  ;;  %p559_p12 = scmp.lt.s32.totalorder %s553_s15, %s553_s15 }
  0x1d   :  { %p560_p13 = por %p559_p12, %p558_p11 }
  0x1f   :  { %p561_p0 = pnand %p560_p13, %p554_p10 }
  0x21   :  { %564 = shalt.err (!%p561_p0)
}
  0x22   :  { %51 = dma.hbm_to_vmem [thread:$0]  %s740_s3, 512, %s46_s11, [#allocation6], %s614_s27, %s614_s27, %s615_s28  }
  0x23   :  { %s618_s17 = smov [#allocation8]  }
  0x24   :  { %s59_s18 = sshll.u32 %s618_s17, 4  ;;  %s60_s18 = int_to_ptr.vmem [resolvable:$true] %s59_s18 }
  0x25   :  { %s573_s19 = scalar_lea.vmem %s60_s18, 512  ;;  %p578_p2 = scmp.lt.s32.totalorder %s60_s18, %s60_s18 }
  0x26   :  { %p574_p1 = scmp.ne.s32.totalorder %s60_s18, %s573_s19  ;;  %p579_p3 = scmp.lt.s32.totalorder %s573_s19, %s573_s19 }
  0x28   :  { %p580_p4 = por %p579_p3, %p578_p2 }
  0x2a   :  { %p581_p5 = pnand %p580_p4, %p574_p1 }
  0x2c   :  { %584 = shalt.err (!%p581_p5)
}
  0x2d   :  { %65 = dma.hbm_to_vmem [thread:$0]  %s742_s5, 512, %s60_s18, [#allocation9], %s614_s27, %s614_s27, %s615_s28  }
  0x2e   :  { %605 = dma.done.wait [#allocation3], 128  }
  0x2f   :  { %606 = vsyncadd [#allocation3], 4294967168 }
  0x30   :  { %607 = dma.done.wait [#allocation6], 1024  }
  0x31   :  { %608 = vsyncadd [#allocation6], 4294966272 }
  0x32   :  { %609 = dma.done.wait [#allocation9], 512  }
  0x33   :  { %610 = vsyncadd [#allocation9], 4294966784  ;;  %v82_v0 = vlaneseq  ;;  %v619_v1 = vmov 0   ;;  %v620_v2 = vmov 2   ;;  %v621_v4 = vmov 0.0   ;;  %v81_v6 = vld [vmem:[#allocation2] sm:$0xff] }
  0x34   :  { %487 = vset.pattern.permute.xlu0 %v619_v1  ;;  %489 = vset.pattern.permute.xlu1 %v620_v2  ;;  %v493_v8 = vld [vmem:[#allocation5 + $0x18] sm:$0xff]   ;;  %v494_v9 = vld [vmem:[#allocation5 + $0x10] sm:$0xff]   ;;  %v622_v10 = vmov 1   ;;  %v623_v11 = vmov 3   ;;  %v495_v12 = vld [vmem:[#allocation5 + $0x8] sm:$0xff]   ;;  %v624_v13 = vmov 4  }
  0x35   :  { %v689_v3 = vand.u32 127, %v82_v0  ;;  %436 = vmatprep.subr.bf16.mxu0 %v621_v4  ;;  %448 = vmatprep.subr.bf16.mxu1 %v621_v4  ;;  %v625_v14 = vmov 5   ;;  %v496_v15 = vld [vmem:[#allocation5] sm:$0xff]   ;;  %vm626_vm0 = vmmov 0   ;;  %v497_v16 = vld [vmem:[#allocation7 + $0x18] sm:$0xff]   ;;  %v498_v17 = vld [vmem:[#allocation7 + $0x10] sm:$0xff]  }
  0x36   :  { %437 = vmatpush3.bf16.msra.mxu0 %v493_v8  ;;  %444 = vmatprep.mubr.msk.bf16.mxu0 %vm626_vm0, %v621_v4  ;;  %vm167_vm7 = vcmask 523264   ;;  %v499_v36 = vld [vmem:[#allocation7 + $0x8] sm:$0xff]   ;;  %v500_v37 = vld [vmem:[#allocation7] sm:$0xff]   ;;  %v501_v38 = vld [vmem:[#allocation8 + $0x18] sm:$0xff]   ;;  %s627_s24 = smov [#allocation10]  }
  0x37   :  { %v84_v5 = vmul.u32 10, %v689_v3  ;;  %438 = vmatprep.subr.bf16.mxu0 %v621_v4  ;;  %456 = vmatprep.mubr.msk.bf16.mxu1 %vm626_vm0, %v621_v4  ;;  %v502_v39 = vld [vmem:[#allocation8 + $0x10] sm:$0xff]   ;;  %v403_v40 = vld [vmem:[%s739_s2] ss:$0 sm:$0xff]  ;;  %v503_v48 = vld [vmem:[#allocation8 + $0x8] sm:$0xff]   ;;  %s386_s25 = sshll.u32 %s627_s24, 4  ;;  %s387_s25 = int_to_ptr.vmem [resolvable:$true] %s386_s25 }
  0x38   :  { %449 = vmatpush3.bf16.msra.mxu1 %v497_v16  ;;  %v504_v49 = vld [vmem:[#allocation8] sm:$0xff]   ;;  %v409_v50 = vld [vmem:[%s741_s4] ss:$0 sm:$0xff]  ;;  %s585_s4 = scalar_lea.vmem %s387_s25, 128  ;;  %p590_p7 = scmp.lt.s32.totalorder %s387_s25, %s387_s25 }
  0x39   :  { %v85_v7 = vadd.s32 %v84_v5, %v81_v6  ;;  %450 = vmatprep.subr.bf16.mxu1 %v621_v4  ;;  %v415_v58 = vld [vmem:[%s743_s6] ss:$0 sm:$0xff]  ;;  %p586_p6 = scmp.ne.s32.totalorder %s387_s25, %s585_s4  ;;  %p591_p8 = scmp.lt.s32.totalorder %s585_s4, %s585_s4 }
  0x3a   :  { %439 = vmatpush3.bf16.msra.mxu0 %v494_v9 }
  0x3b   :  { %87 = vperm.xlu0 %487, %v85_v7   ;;  %100 = vperm.xlu1 %489, %v85_v7   ;;  %p592_p9 = por %p591_p8, %p590_p7 }
  0x3c   :  { %440 = vmatprep.subr.bf16.mxu0 %v621_v4  ;;  %451 = vmatpush3.bf16.msra.mxu1 %v498_v17 }
  0x3d   :  { %452 = vmatprep.subr.bf16.mxu1 %v621_v4  ;;  %p593_p10 = pnand %p592_p9, %p586_p6 }
  0x3e   :  { %441 = vmatpush3.bf16.msra.mxu0 %v495_v12 }
  0x3f   :  { %488 = vset.pattern.permute.xlu0 %v622_v10  ;;  %490 = vset.pattern.permute.xlu1 %v623_v11 }
  0x40   :  { %93 = vperm.xlu0 %488, %v85_v7   ;;  %107 = vperm.xlu1 %490, %v85_v7  }
  0x41   :  { %442 = vmatprep.subr.bf16.mxu0 %v621_v4  ;;  %453 = vmatpush3.bf16.msra.mxu1 %v499_v36 }
  0x42   :  { %443 = vmatpush3.bf16.msra.mxu0 %v496_v15  ;;  %454 = vmatprep.subr.bf16.mxu1 %v621_v4 }
  0x43   :  { %460 = vmatprep.subr.bf16.mxu0 %v621_v4 }
  0x44   :  { %491 = vset.pattern.permute.xlu1 %v624_v13  ;;  %492 = vset.pattern.permute.xlu0 %v625_v14 }
  0x45   :  { %114 = vperm.xlu1 %491, %v85_v7   ;;  %121 = vperm.xlu0 %492, %v85_v7  }
  0x46   :  { %455 = vmatpush3.bf16.msra.mxu1 %v500_v37 }
  0xb6   :  { %v88_v18 = vpop.permute.xlu0 %87  ;;  %v101_v19 = vpop.permute.xlu1 %100 }
  0xb7   :  { %vm89_vm1 = vcmp.eq.s32.totalorder %v689_v3, %v88_v18  ;;  %vm102_vm2 = vcmp.eq.s32.totalorder %v689_v3, %v101_v19 }
  0xb8   :  { %v397_v22 = vsel %vm89_vm1, 1.0, %v621_v4  ;;  %v399_v25 = vsel %vm102_vm2, 1.0, %v621_v4 }
  0xbb   :  { %v94_v20 = vpop.permute.xlu0 %93  ;;  %v108_v21 = vpop.permute.xlu1 %107 }
  0xbc   :  { %vm95_vm3 = vcmp.eq.s32.totalorder %v689_v3, %v94_v20  ;;  %vm109_vm4 = vcmp.eq.s32.totalorder %v689_v3, %v108_v21 }
  0xbd   :  { %v398_v23 = vsel %vm95_vm3, 1.0, %v621_v4  ;;  %v400_v29 = vsel %vm109_vm4, 1.0, %v621_v4 }
  0xbe   :  { %v98_v24 = vadd.f32 %v398_v23, %v397_v22 }
  0xc0   :  { %v105_v26 = vadd.f32 %v399_v25, %v98_v24  ;;  %v115_v27 = vpop.permute.xlu1 %114  ;;  %v122_v28 = vpop.permute.xlu0 %121 }
  0xc1   :  { %vm116_vm5 = vcmp.eq.s32.totalorder %v689_v3, %v115_v27  ;;  %vm123_vm6 = vcmp.eq.s32.totalorder %v689_v3, %v122_v28 }
  0xc2   :  { %v112_v30 = vadd.f32 %v400_v29, %v105_v26  ;;  %v401_v31 = vsel %vm116_vm5, 1.0, %v621_v4  ;;  %v402_v32 = vsel %vm123_vm6, 1.0, %v621_v4 }
  0xc4   :  { %v119_v33 = vadd.f32 %v401_v31, %v112_v30 }
  0xc6   :  { %v126_v34 = vadd.f32 %v402_v32, %v119_v33 }
  0xc8   :  { %v127_v35 = vpack.c.bf16 %v126_v34, %v126_v34 }
  0xca   :  { %445 = vmatmul.mubr.msk.bf16.vlgmr.msra.gmra.mxu0 %vm167_vm7, %v127_v35 }
  0xcb   :  { %468 = vmatprep.mubr.msk.bf16.mxu0 %vm626_vm0, %v621_v4  ;;  %461 = vmatpush3.bf16.msra.mxu0 %v501_v38 }
  0xcc   :  { %462 = vmatprep.subr.bf16.mxu0 %v621_v4 }
  0xcf   :  { %463 = vmatpush3.bf16.msra.mxu0 %v502_v39 }
  0xd0   :  { %464 = vmatprep.subr.bf16.mxu0 %v621_v4 }
  0xd3   :  { %465 = vmatpush3.bf16.msra.mxu0 %v503_v48 }
  0xd4   :  { %466 = vmatprep.subr.bf16.mxu0 %v621_v4 }
  0xd7   :  { %467 = vmatpush3.bf16.msra.mxu0 %v504_v49 }
 0x18a   :  { %v205_v41 = vpop.f32.mrf.mxu0 }
 0x18b   :  { %v206_v42 = vadd.f32 %v403_v40, %v205_v41 }
 0x18c   :  { %v446_v43 = vpop.f32.mrf.mxu0 }
 0x18d   :  { %v211_v44 = vmax.f32 %v206_v42, 0.0 }
 0x18e   :  { %v208_v45 = vpop.f32.mrf.mxu0 }
 0x18f   :  { %v212_v46 = vpack.c.bf16 %v211_v44, %v211_v44 }
 0x190   :  { %v447_v47 = vpop.f32.mrf.mxu0 }
 0x191   :  { %457 = vmatmul.mubr.msk.bf16.vlgmr.msra.gmra.mxu1 %vm167_vm7, %v212_v46 }
 0x251   :  { %v289_v51 = vpop.f32.mrf.mxu1 }
 0x252   :  { %v290_v52 = vadd.f32 %v409_v50, %v289_v51 }
 0x253   :  { %v458_v53 = vpop.f32.mrf.mxu1 }
 0x254   :  { %v295_v54 = vmax.f32 %v290_v52, 0.0 }
 0x255   :  { %v292_v55 = vpop.f32.mrf.mxu1 }
 0x256   :  { %v296_v56 = vpack.c.bf16 %v295_v54, %v295_v54 }
 0x257   :  { %v459_v57 = vpop.f32.mrf.mxu1 }
 0x258   :  { %469 = vmatmul.mubr.msk.bf16.vlgmr.msra.gmra.mxu0 %vm167_vm7, %v296_v56 }
 0x318   :  { %v373_v59 = vpop.f32.mrf.mxu0 }
 0x319   :  { %v374_v60 = vadd.f32 %v415_v58, %v373_v59 }
 0x31a   :  { %v470_v61 = vpop.f32.mrf.mxu0 }
 0x31b   :  { %379 = vst [vmem:[#allocation10] sm:$0xff] %v374_v60 }
 0x31c   :  { %v376_v62 = vpop.f32.mrf.mxu0 }
 0x31d   :  { %596 = shalt.err (!%p593_p10)
}
 0x31e   :  { %389 = dma.vmem_to_hbm [thread:$0]  %s387_s25, 128, %s744_s7, [#allocation4]   ;;  %v471_v63 = vpop.f32.mrf.mxu0 }
 0x31f   :  { %611 = dma.done.wait [#allocation4], 128  }
 0x320   :  { %612 = vsyncadd [#allocation4], 4294967168 }
 0x321   :  { %393 = vsyncpa [#allocation3], 1 }
 0x322   :  { %394 = vsyncpa [#allocation6], 1 }
 0x323   :  { %395 = vsyncpa [#allocation9], 1 }
 0x324   :  { %396 = vsyncpa [#allocation4], 1 }

</bundles_post_ra>
